<compile_context>
chip_gen: v7x
topology: tpu7x:2x2x1
jax: 0.10.0
libtpu: 0.0.40
codegen_flags: <defaults>
</compile_context>

<pallas_src>
import functools

import jax
import jax.numpy as jnp
from jax import lax
from jax.experimental import pallas as pl
from jax.experimental.pallas import tpu as pltpu


def _discrete_latent_kernel(x_ref, g_ref, w1_ref, b1_ref, w2_ref, b2_ref,
                            logits_ref, latents_ref, logp_ref,
                            *, n_categoricals, n_classes):
    K, C = n_categoricals, n_classes
    KC = K * C

    # ---- MLP hot path on the MXU (bf16 inputs, f32 accumulation) ----
    h = jnp.dot(x_ref[...], w1_ref[...],
                preferred_element_type=jnp.float32) + b1_ref[...]
    h = jnp.maximum(h, 0.0)                                          # ReLU
    logits = jnp.dot(h.astype(jnp.bfloat16), w2_ref[...],
                     preferred_element_type=jnp.float32) + b2_ref[...]
    logits_ref[...] = logits                                         # single store

    TM = logits.shape[0]

    # Gumbel-max perturbed logits (noise precomputed in the wrapper).
    y = logits + g_ref[...]                                          # (TM, KC)

    lane = lax.broadcasted_iota(jnp.int32, (TM, KC), 1)

    # Per-categorical stats, accumulated back onto the flat (TM, KC) slab so
    # all heavy elementwise work and all stores stay lane-dense.
    shift = jnp.zeros((TM, KC), jnp.float32)    # per-group max, lane-broadcast
    onehot = jnp.zeros((TM, KC), jnp.float32)   # sampled one-hots, flat
    for k in range(K):                          # K is small; static unroll
        lk = logits[:, k * C:(k + 1) * C]                            # (TM, C)
        yk = y[:, k * C:(k + 1) * C]
        m_k = jnp.max(lk, axis=-1, keepdims=True)                    # (TM, 1)
        ymax_k = jnp.max(yk, axis=-1, keepdims=True)
        iota_c = lax.broadcasted_iota(jnp.int32, (TM, C), 1)
        # first index achieving the max (same tie-breaking as argmax)
        idx_k = jnp.min(jnp.where(yk >= ymax_k, iota_c, C),
                        axis=-1, keepdims=True)                      # (TM, 1)
        in_group = (lane >= k * C) & (lane < (k + 1) * C)
        shift = shift + jnp.where(in_group, m_k, 0.0)
        onehot = onehot + jnp.where(lane == idx_k + k * C, 1.0, 0.0)

    # One wide EUP pass for exp, one for log (instead of K narrow ones).
    e = jnp.exp(logits - shift)                                      # (TM, KC)
    denom = jnp.zeros((TM, KC), jnp.float32)
    for k in range(K):
        s_k = jnp.sum(e[:, k * C:(k + 1) * C], axis=-1, keepdims=True)
        in_group = (lane >= k * C) & (lane < (k + 1) * C)
        denom = denom + jnp.where(in_group, s_k, 0.0)
    logsm = logits - shift - jnp.log(denom)                          # log-softmax

    latents_ref[...] = onehot                                        # single store

    # log_prob per categorical: sum(onehot * logsm) over each class group,
    # assembled into one (TM, K) value -> single store (no 1-lane writes).
    gp = onehot * logsm
    col = lax.broadcasted_iota(jnp.int32, (TM, K), 1)
    logp = jnp.zeros((TM, K), jnp.float32)
    for k in range(K):
        p_k = jnp.sum(gp[:, k * C:(k + 1) * C], axis=-1, keepdims=True)
        logp = logp + jnp.where(col == k, p_k, 0.0)
    logp_ref[...] = logp                                             # single store


def discrete_latent_dist(x, params, key, *, n_categoricals, n_classes,
                         tile_rows=256):
    """x: (..., in_dim) float32. Returns (logits, latents, log_prob)."""
    w1, b1, w2, b2 = params
    K, C = n_categoricals, n_classes
    KC = K * C
    lead = x.shape[:-1]
    in_dim = x.shape[-1]
    hidden = w1.shape[1]

    B = 1
    for d in lead:
        B *= d

    # Row tile: multiple of 8 sublanes, capped so small batches use one block.
    # Tiles are tiny (< 1 MiB) so the default scoped VMEM fits on v5e/v6e/v7x.
    TM = tile_rows
    if B <= TM:
        TM = max(8, ((B + 7) // 8) * 8)
    n_tiles = pl.cdiv(B, TM)
    B_pad = n_tiles * TM

    x2 = x.reshape(B, in_dim)
    if B_pad != B:
        x2 = jnp.pad(x2, ((0, B_pad - B), (0, 0)))
    x2 = x2.astype(jnp.bfloat16)              # halve activation DMA bytes
    w1b = w1.astype(jnp.bfloat16)             # halve weight DMA bytes
    w2b = w2.astype(jnp.bfloat16)

    # Gumbel noise drawn host-side (unique per padded row -> no per-tile seed
    # offset issues inside the kernel).
    g = jax.random.gumbel(key, (B_pad, KC), jnp.float32)

    kernel = functools.partial(_discrete_latent_kernel,
                               n_categoricals=K, n_classes=C)

    logits, latents, logp = pl.pallas_call(
        kernel,
        grid=(n_tiles,),
        out_shape=(
            jax.ShapeDtypeStruct((B_pad, KC), jnp.float32),
            jax.ShapeDtypeStruct((B_pad, KC), jnp.float32),
            jax.ShapeDtypeStruct((B_pad, K), jnp.float32),
        ),
        in_specs=[
            pl.BlockSpec((TM, in_dim), lambda i: (i, 0)),     # x rows (tiled)
            pl.BlockSpec((TM, KC), lambda i: (i, 0)),         # gumbel noise
            pl.BlockSpec((in_dim, hidden), lambda i: (0, 0)),  # W1 (resident)
            pl.BlockSpec((1, hidden), lambda i: (0, 0)),       # b1
            pl.BlockSpec((hidden, KC), lambda i: (0, 0)),      # W2 (resident)
            pl.BlockSpec((1, KC), lambda i: (0, 0)),           # b2
        ],
        out_specs=(
            pl.BlockSpec((TM, KC), lambda i: (i, 0)),
            pl.BlockSpec((TM, KC), lambda i: (i, 0)),
            pl.BlockSpec((TM, K), lambda i: (i, 0)),
        ),
        compiler_params=pltpu.CompilerParams(
            dimension_semantics=("parallel",),
            vmem_limit_bytes=32 * 1024 * 1024,
        ),
    )(x2, g, w1b, b1, w2b, b2)

    logits = logits[:B].reshape(lead + (KC,))
    latents = latents[:B].reshape(lead + (KC,))
    logp = logp[:B].reshape(lead + (K,))
    return logits, latents, logp


def init_params(key, in_dim, hidden_size, n_categoricals, n_classes):
    """Deterministic synthetic parameters (weights stored as (in, out) = W^T)."""
    k1, k2, k3, k4 = jax.random.split(key, 4)
    out_dim = n_categoricals * n_classes
    w1 = jax.random.normal(k1, (in_dim, hidden_size), jnp.float32) * 0.1
    b1 = jax.random.normal(k2, (1, hidden_size), jnp.float32) * 0.01
    w2 = jax.random.normal(k3, (hidden_size, out_dim), jnp.float32) * 0.1
    b2 = jax.random.normal(k4, (1, out_dim), jnp.float32) * 0.01
    return (w1, b1, w2, b2)


if __name__ == "__main__":
    # Small shapes consistent with the module's forward:
    #   x: (batch=2, seq=8, in_dim=32), n_categoricals=4, n_classes=8, hidden=32
    in_dim, hidden_size = 32, 32
    n_categoricals, n_classes = 4, 8
    K, C = n_categoricals, n_classes

    key = jax.random.PRNGKey(0)
    kx, kp, ks = jax.random.split(key, 3)
    x = jax.random.normal(kx, (2, 8, in_dim), jnp.float32)
    params = init_params(kp, in_dim, hidden_size, n_categoricals, n_classes)

    logits, latents, logp = discrete_latent_dist(
        x, params, ks, n_categoricals=K, n_classes=C)
    jax.block_until_ready((logits, latents, logp))

    # ---- sanity checks ----
    assert logits.shape == (2, 8, K * C)
    assert latents.shape == (2, 8, K * C)
    assert logp.shape == (2, 8, K)

    oh = latents.reshape(2, 8, K, C)
    assert bool(jnp.all(jnp.sum(oh, axis=-1) == 1.0))         # exactly one-hot
    assert bool(jnp.all((oh == 0.0) | (oh == 1.0)))

    # log_prob must equal sum(one_hot * log_softmax(logits)) per categorical.
    logsm_ref = jax.nn.log_softmax(logits.reshape(2, 8, K, C), axis=-1)
    ref_logp = jnp.sum(oh * logsm_ref, axis=-1)
    assert bool(jnp.allclose(logp, ref_logp, atol=1e-3, rtol=1e-3))

    # logits must match the reference MLP (bf16 matmul, f32 accumulation).
    w1, b1, w2, b2 = params
    h_ref = jnp.maximum(
        jnp.dot(x.astype(jnp.bfloat16), w1.astype(jnp.bfloat16),
                preferred_element_type=jnp.float32) + b1, 0.0)
    ref_logits = jnp.dot(h_ref.astype(jnp.bfloat16), w2.astype(jnp.bfloat16),
                         preferred_element_type=jnp.float32) + b2
    assert bool(jnp.allclose(logits, ref_logits, atol=2e-2, rtol=2e-2))

    print("KERNEL_OK")
</pallas_src>

<mosaic_0001>
module attributes {stable_mosaic.version = 11 : i64} {
  func.func @_discrete_latent_kernel(%arg0: i32, %arg1: memref<16x32xbf16, #tpu.memory_space<vmem>>, %arg2: memref<16x32xf32, #tpu.memory_space<vmem>>, %arg3: memref<32x32xbf16, #tpu.memory_space<vmem>>, %arg4: memref<1x32xf32, #tpu.memory_space<vmem>>, %arg5: memref<32x32xbf16, #tpu.memory_space<vmem>>, %arg6: memref<1x32xf32, #tpu.memory_space<vmem>>, %arg7: memref<16x32xf32, #tpu.memory_space<vmem>>, %arg8: memref<16x32xf32, #tpu.memory_space<vmem>>, %arg9: memref<16x4xf32, #tpu.memory_space<vmem>>) attributes {dimension_semantics = [#tpu.dimension_semantics<parallel>], iteration_bounds = array<i64: 1>, scalar_prefetch = 0 : i64, scratch_operands = 0 : i64, tpu.core_type = #tpu.core_type<tc>, window_params = [{transform_indices = @transform_0, window_bounds = array<i64: 16, 32>}, {transform_indices = @transform_1, window_bounds = array<i64: 16, 32>}, {pipeline_mode = #tpu.pipeline_mode<synchronous>, transform_indices = @transform_2, window_bounds = array<i64: 32, 32>}, {pipeline_mode = #tpu.pipeline_mode<synchronous>, transform_indices = @transform_3, window_bounds = array<i64: 1, 32>}, {pipeline_mode = #tpu.pipeline_mode<synchronous>, transform_indices = @transform_4, window_bounds = array<i64: 32, 32>}, {pipeline_mode = #tpu.pipeline_mode<synchronous>, transform_indices = @transform_5, window_bounds = array<i64: 1, 32>}, {transform_indices = @transform_6, window_bounds = array<i64: 16, 32>}, {transform_indices = @transform_7, window_bounds = array<i64: 16, 32>}, {transform_indices = @transform_8, window_bounds = array<i64: 16, 4>}]} {
    %c0 = arith.constant 0 : index
    %c0_0 = arith.constant 0 : index
    %0 = vector.load %arg1[%c0, %c0_0] : memref<16x32xbf16, #tpu.memory_space<vmem>>, vector<16x32xbf16>
    %c0_1 = arith.constant 0 : index
    %c0_2 = arith.constant 0 : index
    %1 = vector.load %arg3[%c0_1, %c0_2] : memref<32x32xbf16, #tpu.memory_space<vmem>>, vector<32x32xbf16>
    %cst = arith.constant dense<0.000000e+00> : vector<16x32xf32>
    %2 = tpu.matmul %0, %1, %cst {dimension_numbers = #tpu.dot_dimension_numbers<[1], [0], [0], [1], [0, 0, 1, 1], [], []>} : vector<16x32xbf16>, vector<32x32xbf16>, vector<16x32xf32> -> vector<16x32xf32>
    %c0_3 = arith.constant 0 : index
    %c0_4 = arith.constant 0 : index
    %3 = vector.load %arg4[%c0_3, %c0_4] : memref<1x32xf32, #tpu.memory_space<vmem>>, vector<1x32xf32>
    %4 = vector.broadcast %3 : vector<1x32xf32> to vector<16x32xf32>
    %5 = arith.addf %2, %4 : vector<16x32xf32>
    %cst_5 = arith.constant 0.000000e+00 : f32
    %6 = vector.broadcast %cst_5 : f32 to vector<16x32xf32>
    %7 = arith.maximumf %5, %6 : vector<16x32xf32>
    %8 = arith.truncf %7 : vector<16x32xf32> to vector<16x32xbf16>
    %c0_6 = arith.constant 0 : index
    %c0_7 = arith.constant 0 : index
    %9 = vector.load %arg5[%c0_6, %c0_7] : memref<32x32xbf16, #tpu.memory_space<vmem>>, vector<32x32xbf16>
    %cst_8 = arith.constant dense<0.000000e+00> : vector<16x32xf32>
    %10 = tpu.matmul %8, %9, %cst_8 {dimension_numbers = #tpu.dot_dimension_numbers<[1], [0], [0], [1], [0, 0, 1, 1], [], []>} : vector<16x32xbf16>, vector<32x32xbf16>, vector<16x32xf32> -> vector<16x32xf32>
    %c0_9 = arith.constant 0 : index
    %c0_10 = arith.constant 0 : index
    %11 = vector.load %arg6[%c0_9, %c0_10] : memref<1x32xf32, #tpu.memory_space<vmem>>, vector<1x32xf32>
    %12 = vector.broadcast %11 : vector<1x32xf32> to vector<16x32xf32>
    %13 = arith.addf %10, %12 : vector<16x32xf32>
    %c0_11 = arith.constant 0 : index
    %c0_12 = arith.constant 0 : index
    %14 = vector.load %arg7[%c0_11, %c0_12] : memref<16x32xf32, #tpu.memory_space<vmem>>, vector<16x32xf32>
    tpu.vector_store %arg7[%c0_11, %c0_12], %13 {strides = array<i32>} : memref<16x32xf32, #tpu.memory_space<vmem>>, vector<16x32xf32>,
    %c0_13 = arith.constant 0 : index
    %c0_14 = arith.constant 0 : index
    %15 = vector.load %arg2[%c0_13, %c0_14] : memref<16x32xf32, #tpu.memory_space<vmem>>, vector<16x32xf32>
    %16 = arith.addf %13, %15 : vector<16x32xf32>
    %17 = tpu.iota {dimensions = array<i32: 1>} : vector<16x32xi32>
    %cst_15 = arith.constant 0.000000e+00 : f32
    %18 = vector.broadcast %cst_15 : f32 to vector<16x32xf32>
    %cst_16 = arith.constant 0.000000e+00 : f32
    %19 = vector.broadcast %cst_16 : f32 to vector<16x32xf32>
    %20 = vector.extract_strided_slice %13 {offsets = [0, 0], sizes = [16, 8], strides = [1, 1]} : vector<16x32xf32> to vector<16x8xf32>
    %21 = vector.extract_strided_slice %16 {offsets = [0, 0], sizes = [16, 8], strides = [1, 1]} : vector<16x32xf32> to vector<16x8xf32>
    %cst_17 = arith.constant dense<0xFF800000> : vector<16xf32>
    %22 = vector.multi_reduction <maximumf>, %20, %cst_17 [1] : vector<16x8xf32> to vector<16xf32>
    %23 = vector.shape_cast %22 : vector<16xf32> to vector<16x1xf32>
    %cst_18 = arith.constant dense<0xFF800000> : vector<16xf32>
    %24 = vector.multi_reduction <maximumf>, %21, %cst_18 [1] : vector<16x8xf32> to vector<16xf32>
    %25 = vector.shape_cast %24 : vector<16xf32> to vector<16x1xf32>
    %26 = tpu.iota {dimensions = array<i32: 1>} : vector<16x8xi32>
    %27 = vector.broadcast %25 : vector<16x1xf32> to vector<16x8xf32>
    %28 = arith.cmpf oge, %21, %27 : vector<16x8xf32>
    %c8_i32 = arith.constant 8 : i32
    %29 = vector.broadcast %c8_i32 : i32 to vector<16x8xi32>
    %30 = arith.select %28, %26, %29 : vector<16x8xi1>, vector<16x8xi32>
    %cst_19 = arith.constant dense<2147483647> : vector<16xi32>
    %31 = vector.multi_reduction <minsi>, %30, %cst_19 [1] : vector<16x8xi32> to vector<16xi32>
    %32 = vector.shape_cast %31 : vector<16xi32> to vector<16x1xi32>
    %c0_i32 = arith.constant 0 : i32
    %33 = vector.broadcast %c0_i32 : i32 to vector<16x32xi32>
    %34 = arith.cmpi sge, %17, %33 : vector<16x32xi32>
    %c8_i32_20 = arith.constant 8 : i32
    %35 = vector.broadcast %c8_i32_20 : i32 to vector<16x32xi32>
    %36 = arith.cmpi slt, %17, %35 : vector<16x32xi32>
    %37 = arith.andi %34, %36 : vector<16x32xi1>
    %cst_21 = arith.constant 0.000000e+00 : f32
    %38 = vector.shape_cast %23 : vector<16x1xf32> to vector<16x1xf32>
    %39 = vector.broadcast %38 : vector<16x1xf32> to vector<16x32xf32>
    %40 = vector.broadcast %cst_21 : f32 to vector<16x32xf32>
    %41 = arith.select %37, %39, %40 : vector<16x32xi1>, vector<16x32xf32>
    %42 = arith.addf %18, %41 : vector<16x32xf32>
    %c0_i32_22 = arith.constant 0 : i32
    %43 = vector.broadcast %c0_i32_22 : i32 to vector<16x1xi32>
    %44 = arith.addi %32, %43 : vector<16x1xi32>
    %45 = vector.broadcast %44 : vector<16x1xi32> to vector<16x32xi32>
    %46 = arith.cmpi eq, %17, %45 : vector<16x32xi32>
    %cst_23 = arith.constant 1.000000e+00 : f32
    %cst_24 = arith.constant 0.000000e+00 : f32
    %47 = vector.broadcast %cst_23 : f32 to vector<16x32xf32>
    %48 = vector.broadcast %cst_24 : f32 to vector<16x32xf32>
    %49 = arith.select %46, %47, %48 : vector<16x32xi1>, vector<16x32xf32>
    %50 = arith.addf %19, %49 : vector<16x32xf32>
    %51 = vector.extract_strided_slice %13 {offsets = [0, 8], sizes = [16, 8], strides = [1, 1]} : vector<16x32xf32> to vector<16x8xf32>
    %52 = vector.extract_strided_slice %16 {offsets = [0, 8], sizes = [16, 8], strides = [1, 1]} : vector<16x32xf32> to vector<16x8xf32>
    %cst_25 = arith.constant dense<0xFF800000> : vector<16xf32>
    %53 = vector.multi_reduction <maximumf>, %51, %cst_25 [1] : vector<16x8xf32> to vector<16xf32>
    %54 = vector.shape_cast %53 : vector<16xf32> to vector<16x1xf32>
    %cst_26 = arith.constant dense<0xFF800000> : vector<16xf32>
    %55 = vector.multi_reduction <maximumf>, %52, %cst_26 [1] : vector<16x8xf32> to vector<16xf32>
    %56 = vector.shape_cast %55 : vector<16xf32> to vector<16x1xf32>
    %57 = tpu.iota {dimensions = array<i32: 1>} : vector<16x8xi32>
    %58 = vector.broadcast %56 : vector<16x1xf32> to vector<16x8xf32>
    %59 = arith.cmpf oge, %52, %58 : vector<16x8xf32>
    %c8_i32_27 = arith.constant 8 : i32
    %60 = vector.broadcast %c8_i32_27 : i32 to vector<16x8xi32>
    %61 = arith.select %59, %57, %60 : vector<16x8xi1>, vector<16x8xi32>
    %cst_28 = arith.constant dense<2147483647> : vector<16xi32>
    %62 = vector.multi_reduction <minsi>, %61, %cst_28 [1] : vector<16x8xi32> to vector<16xi32>
    %63 = vector.shape_cast %62 : vector<16xi32> to vector<16x1xi32>
    %c8_i32_29 = arith.constant 8 : i32
    %64 = vector.broadcast %c8_i32_29 : i32 to vector<16x32xi32>
    %65 = arith.cmpi sge, %17, %64 : vector<16x32xi32>
    %c16_i32 = arith.constant 16 : i32
    %66 = vector.broadcast %c16_i32 : i32 to vector<16x32xi32>
    %67 = arith.cmpi slt, %17, %66 : vector<16x32xi32>
    %68 = arith.andi %65, %67 : vector<16x32xi1>
    %cst_30 = arith.constant 0.000000e+00 : f32
    %69 = vector.shape_cast %54 : vector<16x1xf32> to vector<16x1xf32>
    %70 = vector.broadcast %69 : vector<16x1xf32> to vector<16x32xf32>
    %71 = vector.broadcast %cst_30 : f32 to vector<16x32xf32>
    %72 = arith.select %68, %70, %71 : vector<16x32xi1>, vector<16x32xf32>
    %73 = arith.addf %42, %72 : vector<16x32xf32>
    %c8_i32_31 = arith.constant 8 : i32
    %74 = vector.broadcast %c8_i32_31 : i32 to vector<16x1xi32>
    %75 = arith.addi %63, %74 : vector<16x1xi32>
    %76 = vector.broadcast %75 : vector<16x1xi32> to vector<16x32xi32>
    %77 = arith.cmpi eq, %17, %76 : vector<16x32xi32>
    %cst_32 = arith.constant 1.000000e+00 : f32
    %cst_33 = arith.constant 0.000000e+00 : f32
    %78 = vector.broadcast %cst_32 : f32 to vector<16x32xf32>
    %79 = vector.broadcast %cst_33 : f32 to vector<16x32xf32>
    %80 = arith.select %77, %78, %79 : vector<16x32xi1>, vector<16x32xf32>
    %81 = arith.addf %50, %80 : vector<16x32xf32>
    %82 = vector.extract_strided_slice %13 {offsets = [0, 16], sizes = [16, 8], strides = [1, 1]} : vector<16x32xf32> to vector<16x8xf32>
    %83 = vector.extract_strided_slice %16 {offsets = [0, 16], sizes = [16, 8], strides = [1, 1]} : vector<16x32xf32> to vector<16x8xf32>
    %cst_34 = arith.constant dense<0xFF800000> : vector<16xf32>
    %84 = vector.multi_reduction <maximumf>, %82, %cst_34 [1] : vector<16x8xf32> to vector<16xf32>
    %85 = vector.shape_cast %84 : vector<16xf32> to vector<16x1xf32>
    %cst_35 = arith.constant dense<0xFF800000> : vector<16xf32>
    %86 = vector.multi_reduction <maximumf>, %83, %cst_35 [1] : vector<16x8xf32> to vector<16xf32>
    %87 = vector.shape_cast %86 : vector<16xf32> to vector<16x1xf32>
    %88 = tpu.iota {dimensions = array<i32: 1>} : vector<16x8xi32>
    %89 = vector.broadcast %87 : vector<16x1xf32> to vector<16x8xf32>
    %90 = arith.cmpf oge, %83, %89 : vector<16x8xf32>
    %c8_i32_36 = arith.constant 8 : i32
    %91 = vector.broadcast %c8_i32_36 : i32 to vector<16x8xi32>
    %92 = arith.select %90, %88, %91 : vector<16x8xi1>, vector<16x8xi32>
    %cst_37 = arith.constant dense<2147483647> : vector<16xi32>
    %93 = vector.multi_reduction <minsi>, %92, %cst_37 [1] : vector<16x8xi32> to vector<16xi32>
    %94 = vector.shape_cast %93 : vector<16xi32> to vector<16x1xi32>
    %c16_i32_38 = arith.constant 16 : i32
    %95 = vector.broadcast %c16_i32_38 : i32 to vector<16x32xi32>
    %96 = arith.cmpi sge, %17, %95 : vector<16x32xi32>
    %c24_i32 = arith.constant 24 : i32
    %97 = vector.broadcast %c24_i32 : i32 to vector<16x32xi32>
    %98 = arith.cmpi slt, %17, %97 : vector<16x32xi32>
    %99 = arith.andi %96, %98 : vector<16x32xi1>
    %cst_39 = arith.constant 0.000000e+00 : f32
    %100 = vector.shape_cast %85 : vector<16x1xf32> to vector<16x1xf32>
    %101 = vector.broadcast %100 : vector<16x1xf32> to vector<16x32xf32>
    %102 = vector.broadcast %cst_39 : f32 to vector<16x32xf32>
    %103 = arith.select %99, %101, %102 : vector<16x32xi1>, vector<16x32xf32>
    %104 = arith.addf %73, %103 : vector<16x32xf32>
    %c16_i32_40 = arith.constant 16 : i32
    %105 = vector.broadcast %c16_i32_40 : i32 to vector<16x1xi32>
    %106 = arith.addi %94, %105 : vector<16x1xi32>
    %107 = vector.broadcast %106 : vector<16x1xi32> to vector<16x32xi32>
    %108 = arith.cmpi eq, %17, %107 : vector<16x32xi32>
    %cst_41 = arith.constant 1.000000e+00 : f32
    %cst_42 = arith.constant 0.000000e+00 : f32
    %109 = vector.broadcast %cst_41 : f32 to vector<16x32xf32>
    %110 = vector.broadcast %cst_42 : f32 to vector<16x32xf32>
    %111 = arith.select %108, %109, %110 : vector<16x32xi1>, vector<16x32xf32>
    %112 = arith.addf %81, %111 : vector<16x32xf32>
    %113 = vector.extract_strided_slice %13 {offsets = [0, 24], sizes = [16, 8], strides = [1, 1]} : vector<16x32xf32> to vector<16x8xf32>
    %114 = vector.extract_strided_slice %16 {offsets = [0, 24], sizes = [16, 8], strides = [1, 1]} : vector<16x32xf32> to vector<16x8xf32>
    %cst_43 = arith.constant dense<0xFF800000> : vector<16xf32>
    %115 = vector.multi_reduction <maximumf>, %113, %cst_43 [1] : vector<16x8xf32> to vector<16xf32>
    %116 = vector.shape_cast %115 : vector<16xf32> to vector<16x1xf32>
    %cst_44 = arith.constant dense<0xFF800000> : vector<16xf32>
    %117 = vector.multi_reduction <maximumf>, %114, %cst_44 [1] : vector<16x8xf32> to vector<16xf32>
    %118 = vector.shape_cast %117 : vector<16xf32> to vector<16x1xf32>
    %119 = tpu.iota {dimensions = array<i32: 1>} : vector<16x8xi32>
    %120 = vector.broadcast %118 : vector<16x1xf32> to vector<16x8xf32>
    %121 = arith.cmpf oge, %114, %120 : vector<16x8xf32>
    %c8_i32_45 = arith.constant 8 : i32
    %122 = vector.broadcast %c8_i32_45 : i32 to vector<16x8xi32>
    %123 = arith.select %121, %119, %122 : vector<16x8xi1>, vector<16x8xi32>
    %cst_46 = arith.constant dense<2147483647> : vector<16xi32>
    %124 = vector.multi_reduction <minsi>, %123, %cst_46 [1] : vector<16x8xi32> to vector<16xi32>
    %125 = vector.shape_cast %124 : vector<16xi32> to vector<16x1xi32>
    %c24_i32_47 = arith.constant 24 : i32
    %126 = vector.broadcast %c24_i32_47 : i32 to vector<16x32xi32>
    %127 = arith.cmpi sge, %17, %126 : vector<16x32xi32>
    %c32_i32 = arith.constant 32 : i32
    %128 = vector.broadcast %c32_i32 : i32 to vector<16x32xi32>
    %129 = arith.cmpi slt, %17, %128 : vector<16x32xi32>
    %130 = arith.andi %127, %129 : vector<16x32xi1>
    %cst_48 = arith.constant 0.000000e+00 : f32
    %131 = vector.shape_cast %116 : vector<16x1xf32> to vector<16x1xf32>
    %132 = vector.broadcast %131 : vector<16x1xf32> to vector<16x32xf32>
    %133 = vector.broadcast %cst_48 : f32 to vector<16x32xf32>
    %134 = arith.select %130, %132, %133 : vector<16x32xi1>, vector<16x32xf32>
    %135 = arith.addf %104, %134 : vector<16x32xf32>
    %c24_i32_49 = arith.constant 24 : i32
    %136 = vector.broadcast %c24_i32_49 : i32 to vector<16x1xi32>
    %137 = arith.addi %125, %136 : vector<16x1xi32>
    %138 = vector.broadcast %137 : vector<16x1xi32> to vector<16x32xi32>
    %139 = arith.cmpi eq, %17, %138 : vector<16x32xi32>
    %cst_50 = arith.constant 1.000000e+00 : f32
    %cst_51 = arith.constant 0.000000e+00 : f32
    %140 = vector.broadcast %cst_50 : f32 to vector<16x32xf32>
    %141 = vector.broadcast %cst_51 : f32 to vector<16x32xf32>
    %142 = arith.select %139, %140, %141 : vector<16x32xi1>, vector<16x32xf32>
    %143 = arith.addf %112, %142 : vector<16x32xf32>
    %144 = arith.subf %13, %135 : vector<16x32xf32>
    %145 = math.exp %144 : vector<16x32xf32>
    %cst_52 = arith.constant 0.000000e+00 : f32
    %146 = vector.broadcast %cst_52 : f32 to vector<16x32xf32>
    %147 = vector.extract_strided_slice %145 {offsets = [0, 0], sizes = [16, 8], strides = [1, 1]} : vector<16x32xf32> to vector<16x8xf32>
    %cst_53 = arith.constant dense<0.000000e+00> : vector<16xf32>
    %148 = vector.multi_reduction <add>, %147, %cst_53 [1] : vector<16x8xf32> to vector<16xf32>
    %149 = vector.shape_cast %148 : vector<16xf32> to vector<16x1xf32>
    %c0_i32_54 = arith.constant 0 : i32
    %150 = vector.broadcast %c0_i32_54 : i32 to vector<16x32xi32>
    %151 = arith.cmpi sge, %17, %150 : vector<16x32xi32>
    %c8_i32_55 = arith.constant 8 : i32
    %152 = vector.broadcast %c8_i32_55 : i32 to vector<16x32xi32>
    %153 = arith.cmpi slt, %17, %152 : vector<16x32xi32>
    %154 = arith.andi %151, %153 : vector<16x32xi1>
    %cst_56 = arith.constant 0.000000e+00 : f32
    %155 = vector.shape_cast %149 : vector<16x1xf32> to vector<16x1xf32>
    %156 = vector.broadcast %155 : vector<16x1xf32> to vector<16x32xf32>
    %157 = vector.broadcast %cst_56 : f32 to vector<16x32xf32>
    %158 = arith.select %154, %156, %157 : vector<16x32xi1>, vector<16x32xf32>
    %159 = arith.addf %146, %158 : vector<16x32xf32>
    %160 = vector.extract_strided_slice %145 {offsets = [0, 8], sizes = [16, 8], strides = [1, 1]} : vector<16x32xf32> to vector<16x8xf32>
    %cst_57 = arith.constant dense<0.000000e+00> : vector<16xf32>
    %161 = vector.multi_reduction <add>, %160, %cst_57 [1] : vector<16x8xf32> to vector<16xf32>
    %162 = vector.shape_cast %161 : vector<16xf32> to vector<16x1xf32>
    %c8_i32_58 = arith.constant 8 : i32
    %163 = vector.broadcast %c8_i32_58 : i32 to vector<16x32xi32>
    %164 = arith.cmpi sge, %17, %163 : vector<16x32xi32>
    %c16_i32_59 = arith.constant 16 : i32
    %165 = vector.broadcast %c16_i32_59 : i32 to vector<16x32xi32>
    %166 = arith.cmpi slt, %17, %165 : vector<16x32xi32>
    %167 = arith.andi %164, %166 : vector<16x32xi1>
    %cst_60 = arith.constant 0.000000e+00 : f32
    %168 = vector.shape_cast %162 : vector<16x1xf32> to vector<16x1xf32>
    %169 = vector.broadcast %168 : vector<16x1xf32> to vector<16x32xf32>
    %170 = vector.broadcast %cst_60 : f32 to vector<16x32xf32>
    %171 = arith.select %167, %169, %170 : vector<16x32xi1>, vector<16x32xf32>
    %172 = arith.addf %159, %171 : vector<16x32xf32>
    %173 = vector.extract_strided_slice %145 {offsets = [0, 16], sizes = [16, 8], strides = [1, 1]} : vector<16x32xf32> to vector<16x8xf32>
    %cst_61 = arith.constant dense<0.000000e+00> : vector<16xf32>
    %174 = vector.multi_reduction <add>, %173, %cst_61 [1] : vector<16x8xf32> to vector<16xf32>
    %175 = vector.shape_cast %174 : vector<16xf32> to vector<16x1xf32>
    %c16_i32_62 = arith.constant 16 : i32
    %176 = vector.broadcast %c16_i32_62 : i32 to vector<16x32xi32>
    %177 = arith.cmpi sge, %17, %176 : vector<16x32xi32>
    %c24_i32_63 = arith.constant 24 : i32
    %178 = vector.broadcast %c24_i32_63 : i32 to vector<16x32xi32>
    %179 = arith.cmpi slt, %17, %178 : vector<16x32xi32>
    %180 = arith.andi %177, %179 : vector<16x32xi1>
    %cst_64 = arith.constant 0.000000e+00 : f32
    %181 = vector.shape_cast %175 : vector<16x1xf32> to vector<16x1xf32>
    %182 = vector.broadcast %181 : vector<16x1xf32> to vector<16x32xf32>
    %183 = vector.broadcast %cst_64 : f32 to vector<16x32xf32>
    %184 = arith.select %180, %182, %183 : vector<16x32xi1>, vector<16x32xf32>
    %185 = arith.addf %172, %184 : vector<16x32xf32>
    %186 = vector.extract_strided_slice %145 {offsets = [0, 24], sizes = [16, 8], strides = [1, 1]} : vector<16x32xf32> to vector<16x8xf32>
    %cst_65 = arith.constant dense<0.000000e+00> : vector<16xf32>
    %187 = vector.multi_reduction <add>, %186, %cst_65 [1] : vector<16x8xf32> to vector<16xf32>
    %188 = vector.shape_cast %187 : vector<16xf32> to vector<16x1xf32>
    %c24_i32_66 = arith.constant 24 : i32
    %189 = vector.broadcast %c24_i32_66 : i32 to vector<16x32xi32>
    %190 = arith.cmpi sge, %17, %189 : vector<16x32xi32>
    %c32_i32_67 = arith.constant 32 : i32
    %191 = vector.broadcast %c32_i32_67 : i32 to vector<16x32xi32>
    %192 = arith.cmpi slt, %17, %191 : vector<16x32xi32>
    %193 = arith.andi %190, %192 : vector<16x32xi1>
    %cst_68 = arith.constant 0.000000e+00 : f32
    %194 = vector.shape_cast %188 : vector<16x1xf32> to vector<16x1xf32>
    %195 = vector.broadcast %194 : vector<16x1xf32> to vector<16x32xf32>
    %196 = vector.broadcast %cst_68 : f32 to vector<16x32xf32>
    %197 = arith.select %193, %195, %196 : vector<16x32xi1>, vector<16x32xf32>
    %198 = arith.addf %185, %197 : vector<16x32xf32>
    %199 = arith.subf %13, %135 : vector<16x32xf32>
    %200 = math.log %198 : vector<16x32xf32>
    %201 = arith.subf %199, %200 : vector<16x32xf32>
    %c0_69 = arith.constant 0 : index
    %c0_70 = arith.constant 0 : index
    %202 = vector.load %arg8[%c0_69, %c0_70] : memref<16x32xf32, #tpu.memory_space<vmem>>, vector<16x32xf32>
    tpu.vector_store %arg8[%c0_69, %c0_70], %143 {strides = array<i32>} : memref<16x32xf32, #tpu.memory_space<vmem>>, vector<16x32xf32>,
    %203 = arith.mulf %143, %201 : vector<16x32xf32>
    %204 = tpu.iota {dimensions = array<i32: 1>} : vector<16x4xi32>
    %cst_71 = arith.constant 0.000000e+00 : f32
    %205 = vector.broadcast %cst_71 : f32 to vector<16x4xf32>
    %206 = vector.extract_strided_slice %203 {offsets = [0, 0], sizes = [16, 8], strides = [1, 1]} : vector<16x32xf32> to vector<16x8xf32>
    %cst_72 = arith.constant dense<0.000000e+00> : vector<16xf32>
    %207 = vector.multi_reduction <add>, %206, %cst_72 [1] : vector<16x8xf32> to vector<16xf32>
    %208 = vector.shape_cast %207 : vector<16xf32> to vector<16x1xf32>
    %c0_i32_73 = arith.constant 0 : i32
    %209 = vector.broadcast %c0_i32_73 : i32 to vector<16x4xi32>
    %210 = arith.cmpi eq, %204, %209 : vector<16x4xi32>
    %cst_74 = arith.constant 0.000000e+00 : f32
    %211 = vector.shape_cast %208 : vector<16x1xf32> to vector<16x1xf32>
    %212 = vector.broadcast %211 : vector<16x1xf32> to vector<16x4xf32>
    %213 = vector.broadcast %cst_74 : f32 to vector<16x4xf32>
    %214 = arith.select %210, %212, %213 : vector<16x4xi1>, vector<16x4xf32>
    %215 = arith.addf %205, %214 : vector<16x4xf32>
    %216 = vector.extract_strided_slice %203 {offsets = [0, 8], sizes = [16, 8], strides = [1, 1]} : vector<16x32xf32> to vector<16x8xf32>
    %cst_75 = arith.constant dense<0.000000e+00> : vector<16xf32>
    %217 = vector.multi_reduction <add>, %216, %cst_75 [1] : vector<16x8xf32> to vector<16xf32>
    %218 = vector.shape_cast %217 : vector<16xf32> to vector<16x1xf32>
    %c1_i32 = arith.constant 1 : i32
    %219 = vector.broadcast %c1_i32 : i32 to vector<16x4xi32>
    %220 = arith.cmpi eq, %204, %219 : vector<16x4xi32>
    %cst_76 = arith.constant 0.000000e+00 : f32
    %221 = vector.shape_cast %218 : vector<16x1xf32> to vector<16x1xf32>
    %222 = vector.broadcast %221 : vector<16x1xf32> to vector<16x4xf32>
    %223 = vector.broadcast %cst_76 : f32 to vector<16x4xf32>
    %224 = arith.select %220, %222, %223 : vector<16x4xi1>, vector<16x4xf32>
    %225 = arith.addf %215, %224 : vector<16x4xf32>
    %226 = vector.extract_strided_slice %203 {offsets = [0, 16], sizes = [16, 8], strides = [1, 1]} : vector<16x32xf32> to vector<16x8xf32>
    %cst_77 = arith.constant dense<0.000000e+00> : vector<16xf32>
    %227 = vector.multi_reduction <add>, %226, %cst_77 [1] : vector<16x8xf32> to vector<16xf32>
    %228 = vector.shape_cast %227 : vector<16xf32> to vector<16x1xf32>
    %c2_i32 = arith.constant 2 : i32
    %229 = vector.broadcast %c2_i32 : i32 to vector<16x4xi32>
    %230 = arith.cmpi eq, %204, %229 : vector<16x4xi32>
    %cst_78 = arith.constant 0.000000e+00 : f32
    %231 = vector.shape_cast %228 : vector<16x1xf32> to vector<16x1xf32>
    %232 = vector.broadcast %231 : vector<16x1xf32> to vector<16x4xf32>
    %233 = vector.broadcast %cst_78 : f32 to vector<16x4xf32>
    %234 = arith.select %230, %232, %233 : vector<16x4xi1>, vector<16x4xf32>
    %235 = arith.addf %225, %234 : vector<16x4xf32>
    %236 = vector.extract_strided_slice %203 {offsets = [0, 24], sizes = [16, 8], strides = [1, 1]} : vector<16x32xf32> to vector<16x8xf32>
    %cst_79 = arith.constant dense<0.000000e+00> : vector<16xf32>
    %237 = vector.multi_reduction <add>, %236, %cst_79 [1] : vector<16x8xf32> to vector<16xf32>
    %238 = vector.shape_cast %237 : vector<16xf32> to vector<16x1xf32>
    %c3_i32 = arith.constant 3 : i32
    %239 = vector.broadcast %c3_i32 : i32 to vector<16x4xi32>
    %240 = arith.cmpi eq, %204, %239 : vector<16x4xi32>
    %cst_80 = arith.constant 0.000000e+00 : f32
    %241 = vector.shape_cast %238 : vector<16x1xf32> to vector<16x1xf32>
    %242 = vector.broadcast %241 : vector<16x1xf32> to vector<16x4xf32>
    %243 = vector.broadcast %cst_80 : f32 to vector<16x4xf32>
    %244 = arith.select %240, %242, %243 : vector<16x4xi1>, vector<16x4xf32>
    %245 = arith.addf %235, %244 : vector<16x4xf32>
    %c0_81 = arith.constant 0 : index
    %c0_82 = arith.constant 0 : index
    %246 = vector.load %arg9[%c0_81, %c0_82] : memref<16x4xf32, #tpu.memory_space<vmem>>, vector<16x4xf32>
    tpu.vector_store %arg9[%c0_81, %c0_82], %245 {strides = array<i32>} : memref<16x4xf32, #tpu.memory_space<vmem>>, vector<16x4xf32>,
    return
  }
  func.func @transform_0(%arg0: i32) -> (i32, i32) {
    %c0_i32 = arith.constant 0 : i32
    %c0_i32_0 = arith.constant 0 : i32
    return %arg0, %c0_i32 : i32, i32
  }
  func.func @transform_1(%arg0: i32) -> (i32, i32) {
    %c0_i32 = arith.constant 0 : i32
    %c0_i32_0 = arith.constant 0 : i32
    return %arg0, %c0_i32 : i32, i32
  }
  func.func @transform_2(%arg0: i32) -> (i32, i32) {
    %c0_i32 = arith.constant 0 : i32
    %c0_i32_0 = arith.constant 0 : i32
    %c0_i32_1 = arith.constant 0 : i32
    return %c0_i32, %c0_i32_0 : i32, i32
  }
  func.func @transform_3(%arg0: i32) -> (i32, i32) {
    %c0_i32 = arith.constant 0 : i32
    %c0_i32_0 = arith.constant 0 : i32
    %c0_i32_1 = arith.constant 0 : i32
    return %c0_i32, %c0_i32_0 : i32, i32
  }
  func.func @transform_4(%arg0: i32) -> (i32, i32) {
    %c0_i32 = arith.constant 0 : i32
    %c0_i32_0 = arith.constant 0 : i32
    %c0_i32_1 = arith.constant 0 : i32
    return %c0_i32, %c0_i32_0 : i32, i32
  }
  func.func @transform_5(%arg0: i32) -> (i32, i32) {
    %c0_i32 = arith.constant 0 : i32
    %c0_i32_0 = arith.constant 0 : i32
    %c0_i32_1 = arith.constant 0 : i32
    return %c0_i32, %c0_i32_0 : i32, i32
  }
  func.func @transform_6(%arg0: i32) -> (i32, i32) {
    %c0_i32 = arith.constant 0 : i32
    %c0_i32_0 = arith.constant 0 : i32
    return %arg0, %c0_i32 : i32, i32
  }
  func.func @transform_7(%arg0: i32) -> (i32, i32) {
    %c0_i32 = arith.constant 0 : i32
    %c0_i32_0 = arith.constant 0 : i32
    return %arg0, %c0_i32 : i32, i32
  }
  func.func @transform_8(%arg0: i32) -> (i32, i32) {
    %c0_i32 = arith.constant 0 : i32
    %c0_i32_0 = arith.constant 0 : i32
    return %arg0, %c0_i32 : i32, i32
  }
}

</mosaic_0001>

<bundles_post_ra>
// kernel: tpu_custom_call.1
= control target key start
LH: loop header
LB: loop body
LE: loop exit
PB: predicated region body
PF: predicated region fallthrough
CT: control target
= control target key end

     0   :  { %14 = vsyncpa [#allocation3], 0  ;;  %s1340_s0 = inlined_call_operand.hbm [shape: bf16[16,32], index: 0, kind: input, shape index: {}]   ;;  %s1341_s1 = inlined_call_operand.hbm [shape: f32[16,32], index: 1, kind: input, shape index: {}]   ;;  %s1342_s2 = inlined_call_operand.hbm [shape: bf16[32,32], index: 2, kind: input, shape index: {}]   ;;  %s1343_s3 = inlined_call_operand.vmem [shape: f32[1,32], index: 3, kind: input, shape index: {}]   ;;  %s1344_s4 = inlined_call_operand.hbm [shape: bf16[32,32], index: 4, kind: input, shape index: {}]   ;;  %s1345_s5 = inlined_call_operand.vmem [shape: f32[1,32], index: 5, kind: input, shape index: {}]   ;;  %s1346_s6 = inlined_call_operand.hbm [shape: f32[16,32], index: 6, kind: output, shape index: {0}]   ;;  %s1347_s7 = inlined_call_operand.hbm [shape: f32[16,32], index: 7, kind: output, shape index: {1}]   ;;  %s1348_s8 = inlined_call_operand.vmem [shape: f32[16,4], index: 8, kind: output, shape index: {2}]  }
   0x1   :  { %15 = vsyncpa [#allocation6], 0 }
   0x2   :  { %16 = vsyncpa [#allocation9], 0 }
   0x3   :  { %17 = vsyncpa [#allocation4], 0 }
   0x4   :  { %18 = vsyncpa [#allocation12], 0  ;;  %s874_s27 = smov [#allocation5]   ;;  %s732_s9 = scalar_lea.hbm %s1341_s1, 256 }
   0x5   :  { %s36_s28 = sshll.u32 %s874_s27, 4  ;;  %p733_p0 = scmp.ne.s32.totalorder %s1341_s1, %s732_s9  ;;  %s37_s28 = int_to_ptr.vmem [resolvable:$true] %s36_s28 }
   0x6   :  { %p736_p1 = scmp.lt.u32.totalorder %s732_s9, %s1341_s1 }
   0x8   :  { %p738_p2 = pnand %p736_p1, %p733_p0 }
   0xa   :  { %741 = shalt.err (!%p738_p2)
}
   0xb   :  { %s742_s14 = scalar_lea.vmem %s37_s28, 256  ;;  %p747_p4 = scmp.lt.s32.totalorder %s37_s28, %s37_s28 }
   0xc   :  { %p743_p3 = scmp.ne.s32.totalorder %s37_s28, %s742_s14  ;;  %p748_p5 = scmp.lt.s32.totalorder %s742_s14, %s742_s14 }
   0xe   :  { %p749_p6 = por %p748_p5, %p747_p4 }
  0x10   :  { %p750_p7 = pnand %p749_p6, %p743_p3 }
  0x12   :  { %753 = shalt.err (!%p750_p7)
}
  0x13   :  { %s875_s15 = smov 128   ;;  %s876_s16 = smov 8  }
  0x14   :  { %42 = dma.hbm_to_vmem [thread:$0]  %s1341_s1, 256, %s37_s28, [#allocation6], %s875_s15, %s875_s15, %s876_s16  }
  0x15   :  { %s877_s19 = smov [#allocation2]   ;;  %s754_s23 = scalar_lea.hbm %s1340_s0, 128 }
  0x16   :  { %s24_s20 = sshll.u32 %s877_s19, 4  ;;  %p755_p8 = scmp.ne.s32.totalorder %s1340_s0, %s754_s23  ;;  %s25_s20 = int_to_ptr.vmem [resolvable:$true] %s24_s20 }
  0x17   :  { %p758_p9 = scmp.lt.u32.totalorder %s754_s23, %s1340_s0 }
  0x19   :  { %p760_p10 = pnand %p758_p9, %p755_p8 }
  0x1b   :  { %763 = shalt.err (!%p760_p10)
}
  0x1c   :  { %s764_s29 = scalar_lea.vmem %s25_s20, 128  ;;  %p769_p12 = scmp.lt.s32.totalorder %s25_s20, %s25_s20 }
  0x1d   :  { %p765_p11 = scmp.ne.s32.totalorder %s25_s20, %s764_s29  ;;  %p770_p13 = scmp.lt.s32.totalorder %s764_s29, %s764_s29 }
  0x1f   :  { %p771_p0 = por %p770_p13, %p769_p12 }
  0x21   :  { %p772_p1 = pnand %p771_p0, %p765_p11 }
  0x23   :  { %775 = shalt.err (!%p772_p1)
}
  0x24   :  { %s878_s1 = smov 64   ;;  %s879_s28 = smov 4  }
  0x25   :  { %30 = dma.hbm_to_vmem [thread:$0]  %s1340_s0, 128, %s25_s20, [#allocation3], %s878_s1, %s878_s1, %s879_s28  }
  0x26   :  { %s880_s10 = smov [#allocation7]   ;;  %s881_s12 = smov [#allocation8]  }
  0x27   :  { %s48_s11 = sshll.u32 %s880_s10, 4  ;;  %s62_s13 = sshll.u32 %s881_s12, 4  ;;  %s49_s11 = int_to_ptr.vmem [resolvable:$true] %s48_s11  ;;  %s966_s13 = int_to_ptr.vmem [resolvable:$true] %s62_s13 }
  0x28   :  { %s776_s18 = scalar_lea.hbm %s1342_s2, 256 }
  0x29   :  { %p777_p2 = scmp.ne.s32.totalorder %s1342_s2, %s776_s18  ;;  %p780_p3 = scmp.lt.u32.totalorder %s776_s18, %s1342_s2 }
  0x2b   :  { %p782_p4 = pnand %p780_p3, %p777_p2 }
  0x2d   :  { %785 = shalt.err (!%p782_p4)
}
  0x2e   :  { %s786_s0 = scalar_lea.vmem %s49_s11, 256  ;;  %p791_p6 = scmp.lt.s32.totalorder %s49_s11, %s49_s11 }
  0x2f   :  { %p787_p5 = scmp.ne.s32.totalorder %s49_s11, %s786_s0  ;;  %p792_p7 = scmp.lt.s32.totalorder %s786_s0, %s786_s0 }
  0x31   :  { %p793_p8 = por %p792_p7, %p791_p6 }
  0x33   :  { %p794_p9 = pnand %p793_p8, %p787_p5 }
  0x35   :  { %797 = shalt.err (!%p794_p9)
}
  0x36   :  { %54 = dma.hbm_to_vmem [thread:$0]  %s1342_s2, 256, %s49_s11, [#allocation6], %s878_s1, %s878_s1, %s879_s28  }
  0x37   :  { %s798_s27 = scalar_lea.hbm %s1344_s4, 256 }
  0x38   :  { %p799_p10 = scmp.ne.s32.totalorder %s1344_s4, %s798_s27  ;;  %p802_p11 = scmp.lt.u32.totalorder %s798_s27, %s1344_s4 }
  0x3a   :  { %p804_p12 = pnand %p802_p11, %p799_p10 }
  0x3c   :  { %807 = shalt.err (!%p804_p12)
}
  0x3d   :  { %s808_s12 = scalar_lea.vmem %s966_s13, 256  ;;  %p813_p0 = scmp.lt.s32.totalorder %s966_s13, %s966_s13 }
  0x3e   :  { %p809_p13 = scmp.ne.s32.totalorder %s966_s13, %s808_s12  ;;  %p814_p1 = scmp.lt.s32.totalorder %s808_s12, %s808_s12 }
  0x40   :  { %p815_p2 = por %p814_p1, %p813_p0 }
  0x42   :  { %p816_p3 = pnand %p815_p2, %p809_p13 }
  0x44   :  { %819 = shalt.err (!%p816_p3)
}
  0x45   :  { %68 = dma.hbm_to_vmem [thread:$0]  %s1344_s4, 256, %s966_s13, [#allocation9], %s878_s1, %s878_s1, %s879_s28  }
  0x46   :  { %864 = dma.done.wait [#allocation3], 128  }
  0x47   :  { %865 = vsyncadd [#allocation3], 4294967168 }
  0x48   :  { %866 = dma.done.wait [#allocation6], 512  }
  0x49   :  { %867 = vsyncadd [#allocation6], 4294966784 }
  0x4a   :  { %868 = dma.done.wait [#allocation9], 256  }
  0x4b   :  { %869 = vsyncadd [#allocation9], 4294967040  ;;  %v882_v0 = vmov 0.0   ;;  %vm883_vm0 = vmmov 0   ;;  %v719_v1 = vld [vmem:[#allocation7] sm:$0xff]   ;;  %v720_v2 = vld [vmem:[#allocation7 + $0x8] sm:$0xff]   ;;  %v235_v35 = vlaneseq }
  0x4c   :  { %686 = vmatprep.subr.bf16.mxu0 %v882_v0  ;;  %690 = vmatprep.mubr.msk.bf16.mxu0 %vm883_vm0, %v882_v0  ;;  %v721_v3 = vld [vmem:[#allocation2] sm:$0xff]   ;;  %vm114_vm1 = vcmask 261120   ;;  %v722_v4 = vld [vmem:[#allocation8] sm:$0xff]   ;;  %v723_v5 = vld [vmem:[#allocation8 + $0x8] sm:$0xff]   ;;  %vm297_vm2 = vcmask 130112   ;;  %vm237_vm3 = vcmask 64512  }
  0x4d   :  { %694 = vmatprep.subr.bf16.mxu1 %v882_v0  ;;  %698 = vmatprep.mubr.msk.bf16.mxu1 %vm883_vm0, %v882_v0  ;;  %v671_v6 = vld [vmem:[%s1343_s3] ss:$0 sm:$0xff]  ;;  %vm361_vm4 = vcmask 195712   ;;  %vm425_vm5 = vcmask 261312   ;;  %v231_v29 = vld [vmem:[#allocation5] sm:$0xff]  ;;  %v1050_v37 = vand.u32 127, %v235_v35 }
  0x4e   :  { %687 = vmatpush3.bf16.msra.mxu0 %v719_v1  ;;  %695 = vmatpush3.bf16.msra.mxu1 %v722_v4  ;;  %v676_v16 = vld [vmem:[%s1345_s5] ss:$0 sm:$0xff]  ;;  %s884_s3 = smov 16   ;;  %v232_v39 = vld [vmem:[#allocation5 + $0x8] sm:$0xff]  ;;  %s885_s5 = smov 24  }
  0x4f   :  { %688 = vmatprep.subr.bf16.mxu0 %v882_v0  ;;  %696 = vmatprep.subr.bf16.mxu1 %v882_v0  ;;  %vm346_vm6 = vcmp.ge.s32.totalorder %v1050_v37, 8  ;;  %vm347_vm7 = vcmp.lt.s32.totalorder %v1050_v37, 16  ;;  %vm285_vm9 = vcmp.lt.s32.totalorder %v1050_v37, 8  ;;  %vm410_vm10 = vcmp.ge.s32.totalorder %v1050_v37, 16  ;;  %s886_s14 = smov 120   ;;  %s887_s17 = smov 112  }
  0x50   :  { %vm1071_vm8 = vmand %vm346_vm6, %vm347_vm7  ;;  %vm411_vm11 = vcmp.lt.s32.totalorder %v1050_v37, 24  ;;  %vm474_vm13 = vcmp.ge.s32.totalorder %v1050_v37, 24  ;;  %vm475_vm14 = vcmp.lt.s32.totalorder %v1050_v37, 32  ;;  %s888_s18 = smov 104   ;;  %s889_s19 = smov [#allocation10]  }
  0x51   :  { %vm1082_vm12 = vmand %vm410_vm10, %vm411_vm11  ;;  %s637_s21 = sshll.u32 %s889_s19, 4  ;;  %s890_s22 = smov [#allocation11]   ;;  %s638_s21 = int_to_ptr.vmem [resolvable:$true] %s637_s21 }
  0x52   :  { %689 = vmatpush3.bf16.msra.mxu0 %v720_v2  ;;  %697 = vmatpush3.bf16.msra.mxu1 %v723_v5  ;;  %vm1090_vm15 = vmand %vm474_vm13, %vm475_vm14  ;;  %s649_s23 = sshll.u32 %s890_s22, 4  ;;  %s820_s0 = scalar_lea.vmem %s638_s21, 256  ;;  %s1293_s23 = int_to_ptr.vmem [resolvable:$true] %s649_s23 }
  0x53   :  { %p821_p4 = scmp.ne.s32.totalorder %s638_s21, %s820_s0  ;;  %p825_p5 = scmp.lt.s32.totalorder %s638_s21, %s638_s21 }
  0x54   :  { %p826_p6 = scmp.lt.s32.totalorder %s820_s0, %s820_s0 }
  0x55   :  { %691 = vmatmul.mubr.msk.bf16.vlgmr.msra.gmra.mrb[0].mxu0 %vm114_vm1, %v721_v3 }
  0x56   :  { %p827_p7 = por %p826_p6, %p825_p5 }
  0x58   :  { %p828_p8 = pnand %p827_p7, %p821_p4 }
 0x128   :  { %v152_v7 = vpop.f32.mrb[0].mxu0 }
 0x129   :  { %v153_v8 = vadd.f32 %v671_v6, %v152_v7  ;;  %v692_v9 = vpop.f32.mrb[1].mxu0 }
 0x12a   :  { %v155_v10 = vpop.f32.mrb[2].mxu0 }
 0x12b   :  { %v156_v11 = vadd.f32 %v671_v6, %v155_v10  ;;  %v693_v12 = vpop.f32.mrb[3].mxu0  ;;  %v159_v13 = vmax.f32 %v153_v8, 0.0 }
 0x12d   :  { %v160_v14 = vmax.f32 %v156_v11, 0.0 }
 0x12f   :  { %v161_v15 = vpack.c.bf16 %v160_v14, %v159_v13 }
 0x131   :  { %699 = vmatmul.mubr.msk.bf16.vlgmr.msra.gmra.mrb[0].mxu1 %vm114_vm1, %v161_v15 }
 0x204   :  { %v222_v17 = vpop.f32.mrb[0].mxu1 }
 0x205   :  { %v1017_v18 = vadd.f32 %v676_v16, %v222_v17  ;;  %v700_v19 = vpop.f32.mrb[1].mxu1 }
 0x206   :  { %v225_v20 = vpop.f32.mrb[2].mxu1 }
 0x207   :  { %229 = vst.msk [vmem:[#allocation10] sm:$0xff] %vm114_vm1, %v1017_v18  ;;  %v1021_v21 = vadd.f32 %v676_v16, %v225_v20  ;;  %v701_v22 = vpop.f32.mrb[3].mxu1  ;;  %v298_v23 = vsel %vm297_vm2, %v1017_v18, -inf  ;;  %v238_v24 = vsel %vm237_vm3, %v1017_v18, -inf  ;;  %v362_v25 = vsel %vm361_vm4, %v1017_v18, -inf }
 0x208   :  { %299 = vmax.xlane.f32.xlu1 %v298_v23  ;;  %239 = vmax.xlane.f32.xlu0 %v238_v24  ;;  %v426_v27 = vsel %vm425_vm5, %v1017_v18, -inf  ;;  %v1038_v30 = vadd.f32 %v231_v29, %v1017_v18 }
 0x209   :  { %230 = vst.msk [vmem:[#allocation10 + $0x8] sm:$0xff] %vm114_vm1, %v1021_v21  ;;  %v301_v26 = vsel %vm297_vm2, %v1021_v21, -inf  ;;  %v365_v28 = vsel %vm361_vm4, %v1021_v21, -inf  ;;  %v429_v31 = vsel %vm425_vm5, %v1021_v21, -inf  ;;  %v241_v32 = vsel %vm237_vm3, %v1021_v21, -inf }
 0x20a   :  { %v304_v33 = vsel %vm297_vm2, %v1038_v30, -inf  ;;  %v244_v34 = vsel %vm237_vm3, %v1038_v30, -inf  ;;  %v368_v36 = vsel %vm361_vm4, %v1038_v30, -inf  ;;  %v432_v38 = vsel %vm425_vm5, %v1038_v30, -inf }
 0x20b   :  { %v1058_v40 = vadd.f32 %v232_v39, %v1021_v21 }
 0x20c   :  { %363 = vmax.xlane.f32.xlu0 %v362_v25  ;;  %302 = vmax.xlane.f32.xlu1 %v301_v26 }
 0x20d   :  { %v307_v41 = vsel %vm297_vm2, %v1058_v40, -inf  ;;  %v247_v42 = vsel %vm237_vm3, %v1058_v40, -inf  ;;  %v371_v43 = vsel %vm361_vm4, %v1058_v40, -inf  ;;  %v435_v44 = vsel %vm425_vm5, %v1058_v40, -inf }
 0x210   :  { %427 = vmax.xlane.f32.xlu0 %v426_v27  ;;  %366 = vmax.xlane.f32.xlu1 %v365_v28 }
 0x214   :  { %430 = vmax.xlane.f32.xlu1 %v429_v31  ;;  %242 = vmax.xlane.f32.xlu0 %v241_v32 }
 0x218   :  { %305 = vmax.xlane.f32.xlu0 %v304_v33 }
 0x21c   :  { %245 = vmax.xlane.f32.xlu0 %v244_v34 }
 0x220   :  { %369 = vmax.xlane.f32.xlu0 %v368_v36 }
 0x224   :  { %433 = vmax.xlane.f32.xlu0 %v432_v38 }
 0x225   :  { %376 = vrot.lane.b32.xlu1 %v1050_v37, %s884_s3 }
 0x23a   :  { %312 = vrot.lane.b32.xlu0 %v1050_v37, %s876_s16 }
 0x249   :  { %308 = vmax.xlane.f32.xlu1 %v307_v41 }
 0x24d   :  { %248 = vmax.xlane.f32.xlu1 %v247_v42 }
 0x251   :  { %372 = vmax.xlane.f32.xlu1 %v371_v43 }
 0x255   :  { %436 = vmax.xlane.f32.xlu1 %v435_v44 }
 0x266   :  { %440 = vrot.lane.b32.xlu1 %v1050_v37, %s885_s5 }
 0x295   :  { %v300_v46 = vpop.xlane.xlu1 %299  ;;  %v240_v47 = vpop.xlane.xlu0 %239 }
 0x296   :  { %v349_v48 = vsel %vm1071_vm8, %v300_v46, 0.0  ;;  %v287_v49 = vsel %vm285_vm9, %v240_v47, 0.0 }
 0x297   :  { %v351_v51 = vadd.f32 %v349_v48, %v287_v49 }
 0x299   :  { %v364_v52 = vpop.xlane.xlu0 %363  ;;  %v303_v59 = vpop.xlane.xlu1 %302 }
 0x29a   :  { %v413_v53 = vsel %vm1082_vm12, %v364_v52, 0.0  ;;  %v350_v38 = vsel %vm1071_vm8, %v303_v59, 0.0 }
 0x29b   :  { %v415_v54 = vadd.f32 %v413_v53, %v351_v51 }
 0x29d   :  { %v428_v56 = vpop.xlane.xlu0 %427  ;;  %v367_v62 = vpop.xlane.xlu1 %366 }
 0x29e   :  { %v477_v57 = vsel %vm1090_vm15, %v428_v56, 0.0  ;;  %v414_v43 = vsel %vm1082_vm12, %v367_v62, 0.0 }
 0x29f   :  { %v1096_v58 = vadd.f32 %v477_v57, %v415_v54 }
 0x2a1   :  { %v243_v60 = vpop.xlane.xlu0 %242  ;;  %v431_v3 = vpop.xlane.xlu1 %430 }
 0x2a2   :  { %v288_v33 = vsel %vm285_vm9, %v243_v60, 0.0  ;;  %v478_v52 = vsel %vm1090_vm15, %v431_v3, 0.0 }
 0x2a3   :  { %v352_v39 = vadd.f32 %v350_v38, %v288_v33 }
 0x2a5   :  { %v306_v61 = vpop.xlane.xlu0 %305  ;;  %v377_v8 = vpop.permute.xlu1 %376  ;;  %v416_v47 = vadd.f32 %v414_v43, %v352_v39 }
 0x2a6   :  { %vm310_vm7 = vcmp.ge.f32.partialorder %v1038_v30, %v306_v61 }
 0x2a7   :  { %v480_v56 = vadd.f32 %v478_v52, %v416_v47 }
 0x2a9   :  { %v246_v63 = vpop.xlane.xlu0 %245  ;;  %v1178_v59 = vsub.f32 %v1021_v21, %v480_v56 }
 0x2aa   :  { %vm250_vm0 = vcmp.ge.f32.partialorder %v1038_v30, %v246_v63 }
 0x2ab   :  { %v252_v1 = vsel %vm250_vm0, %v1050_v37, 8 }
 0x2ac   :  { %v1101_v2 = vsel %vm237_vm3, %v252_v1, 2147483647 }
 0x2ad   :  { %v370_v4 = vpop.xlane.xlu0 %369  ;;  %v256_v5 = vshra.s32 %v1101_v2, 16 }
 0x2ae   :  { %vm374_vm6 = vcmp.ge.f32.partialorder %v1038_v30, %v370_v4 }
 0x2af   :  { %v1104_v6 = vcvt.s32.f32 %v256_v5  ;;  %v378_v9 = vsel %vm374_vm6, %v377_v8, 8 }
 0x2b0   :  { %v1110_v12 = vsel %vm361_vm4, %v378_v9, 2147483647 }
 0x2b1   :  { %259 = vmin.xlane.f32.xlu0 %v1104_v6  ;;  %v434_v7 = vpop.xlane.xlu0 %433  ;;  %v382_v16 = vshra.s32 %v1110_v12, 16  ;;  %v381_v38 = vand.u32 65535, %v1110_v12 }
 0x2b2   :  { %vm438_vm13 = vcmp.ge.f32.partialorder %v1038_v30, %v434_v7 }
 0x2b3   :  { %v1120_v17 = vcvt.s32.f32 %v382_v16 }
 0x2b5   :  { %v313_v10 = vpop.permute.xlu0 %312 }
 0x2b6   :  { %v314_v11 = vsel %vm310_vm7, %v313_v10, 8 }
 0x2b7   :  { %v1113_v13 = vsel %vm297_vm2, %v314_v11, 2147483647 }
 0x2b8   :  { %v318_v14 = vshra.s32 %v1113_v13, 16 }
 0x2ba   :  { %v1116_v15 = vcvt.s32.f32 %v318_v14 }
 0x2bc   :  { %321 = vmin.xlane.f32.xlu1 %v1116_v15 }
 0x2c0   :  { %385 = vmin.xlane.f32.xlu1 %v1120_v17 }
 0x2d6   :  { %v309_v19 = vpop.xlane.xlu1 %308 }
 0x2d7   :  { %vm311_vm10 = vcmp.ge.f32.partialorder %v1058_v40, %v309_v19 }
 0x2d8   :  { %v315_v20 = vsel %vm311_vm10, %v313_v10, 8 }
 0x2d9   :  { %v1125_v22 = vsel %vm297_vm2, %v315_v20, 2147483647 }
 0x2da   :  { %v249_v23 = vpop.xlane.xlu1 %248  ;;  %v333_v24 = vshra.s32 %v1125_v22, 16 }
 0x2db   :  { %vm251_vm11 = vcmp.ge.f32.partialorder %v1058_v40, %v249_v23 }
 0x2dc   :  { %v253_v25 = vsel %vm251_vm11, %v1050_v37, 8  ;;  %v1130_v26 = vcvt.s32.f32 %v333_v24 }
 0x2dd   :  { %v1133_v27 = vsel %vm237_vm3, %v253_v25, 2147483647  ;;  %v255_v25 = vand.u32 65535, %v1101_v2 }
 0x2de   :  { %336 = vmin.xlane.f32.xlu0 %v1130_v26  ;;  %v373_v28 = vpop.xlane.xlu1 %372  ;;  %v271_v29 = vshra.s32 %v1133_v27, 16  ;;  %v270_v2 = vand.u32 65535, %v1133_v27 }
 0x2df   :  { %vm375_vm2 = vcmp.ge.f32.partialorder %v1058_v40, %v373_v28  ;;  %v317_v28 = vand.u32 65535, %v1113_v13 }
 0x2e0   :  { %v379_v31 = vsel %vm375_vm2, %v377_v8, 8  ;;  %v1138_v32 = vcvt.s32.f32 %v271_v29 }
 0x2e1   :  { %v1143_v34 = vsel %vm361_vm4, %v379_v31, 2147483647 }
 0x2e2   :  { %274 = vmin.xlane.f32.xlu0 %v1138_v32  ;;  %v437_v35 = vpop.xlane.xlu1 %436  ;;  %v397_v36 = vshra.s32 %v1143_v34, 16  ;;  %v396_v43 = vand.u32 65535, %v1143_v34 }
 0x2e3   :  { %vm439_vm14 = vcmp.ge.f32.partialorder %v1058_v40, %v437_v35  ;;  %v1166_v40 = vsub.f32 %v1017_v18, %v1096_v58  ;;  %v493_v18 = vmul.f32 1.442695, %v1178_v59  ;;  %v257_v35 = vcvt.s32.f32 %v255_v25 }
 0x2e4   :  { %v1149_v41 = vcvt.s32.f32 %v397_v36  ;;  %v319_v36 = vcvt.s32.f32 %v317_v28  ;;  %v398_v27 = vcvt.s32.f32 %v396_v43 }
 0x2e5   :  { %v491_v57 = vmul.f32 1.442695, %v1166_v40 }
 0x2e6   :  { %400 = vmin.xlane.f32.xlu0 %v1149_v41  ;;  %v441_v42 = vpop.permute.xlu1 %440 }
 0x2e7   :  { %v442_v44 = vsel %vm438_vm13, %v441_v42, 8  ;;  %v443_v46 = vsel %vm439_vm14, %v441_v42, 8  ;;  %724 = vpow2.f32 %v491_v57  ;;  %v272_v42 = vcvt.s32.f32 %v270_v2 }
 0x2e8   :  { %v1157_v48 = vsel %vm425_vm5, %v442_v44, 2147483647  ;;  %v1160_v49 = vsel %vm425_vm5, %v443_v46, 2147483647  ;;  %726 = vpow2.f32 %v493_v18 }
 0x2e9   :  { %v461_v51 = vshra.s32 %v1160_v49, 16  ;;  %v446_v30 = vshra.s32 %v1157_v48, 16  ;;  %v460_v46 = vand.u32 65535, %v1160_v49 }
 0x2eb   :  { %v1170_v53 = vcvt.s32.f32 %v461_v51  ;;  %v1172_v54 = vcvt.s32.f32 %v446_v30  ;;  %v462_v34 = vcvt.s32.f32 %v460_v46 }
 0x2ed   :  { %464 = vmin.xlane.f32.xlu0 %v1170_v53  ;;  %449 = vmin.xlane.f32.xlu1 %v1172_v54 }
 0x2f1   :  { %v725_v58 = vpop.eup %724 }
 0x2f2   :  { %v727_v60 = vpop.eup %726  ;;  %v495_v21 = vsel %vm237_vm3, %v725_v58, 0.0 }
 0x2f3   :  { %v498_v61 = vsel %vm237_vm3, %v727_v60, 0.0 }
 0x2fe   :  { %507 = vrot.lane.b32.xlu1 %v725_v58, %s886_s14 }
 0x302   :  { %523 = vrot.lane.b32.xlu1 %v725_v58, %s887_s17 }
 0x303   :  { %509 = vrot.lane.b32.xlu0 %v727_v60, %s886_s14 }
 0x306   :  { %525 = vrot.lane.b32.xlu1 %v727_v60, %s887_s17 }
 0x307   :  { %541 = vrot.lane.b32.xlu0 %v727_v60, %s888_s18 }
 0x30a   :  { %539 = vrot.lane.b32.xlu1 %v725_v58, %s888_s18 }
 0x326   :  { %496 = vadd.xlane.f32.xlu0 %v495_v21 }
 0x32a   :  { %499 = vadd.xlane.f32.xlu0 %v498_v61 }
 0x33e   :  { %v1189_v62 = vpop.xlane.xlu0 %259 }
 0x33f   :  { %vm261_vm4 = vcmp.eq.f32.partialorder %v1104_v6, %v1189_v62  ;;  %v383_v6 = vcvt.s32.f32 %v381_v38 }
 0x340   :  { %v262_v13 = vsel %vm261_vm4, %v257_v35, inf }
 0x349   :  { %v1193_v1 = vpop.xlane.xlu1 %321 }
 0x34a   :  { %vm323_vm5 = vcmp.eq.f32.partialorder %v1116_v15, %v1193_v1  ;;  %v332_v15 = vand.u32 65535, %v1125_v22  ;;  %v328_v58 = vcvt.f32.s32 %v1193_v1 }
 0x34b   :  { %v324_v39 = vsel %vm323_vm5, %v319_v36, inf }
 0x34d   :  { %v1197_v4 = vpop.xlane.xlu1 %385 }
 0x34e   :  { %vm387_vm0 = vcmp.eq.f32.partialorder %v1120_v17, %v1197_v4  ;;  %v334_v17 = vcvt.s32.f32 %v332_v15 }
 0x34f   :  { %v388_v44 = vsel %vm387_vm0, %v383_v6, inf }
 0x36b   :  { %v1191_v63 = vpop.xlane.xlu0 %336 }
 0x36c   :  { %vm338_vm7 = vcmp.eq.f32.partialorder %v1130_v26, %v1191_v63  ;;  %v343_v55 = vcvt.f32.s32 %v1191_v63 }
 0x36d   :  { %v339_v47 = vsel %vm338_vm7, %v334_v17, inf }
 0x36f   :  { %v1195_v3 = vpop.xlane.xlu0 %274 }
 0x370   :  { %vm276_vm6 = vcmp.eq.f32.partialorder %v1138_v32, %v1195_v3  ;;  %v445_v32 = vand.u32 65535, %v1157_v48  ;;  %v281_v35 = vcvt.f32.s32 %v1195_v3 }
 0x371   :  { %v277_v12 = vsel %vm276_vm6, %v272_v42, inf }
 0x372   :  { %v447_v26 = vcvt.s32.f32 %v445_v32  ;;  %v282_v43 = vshll.u32 %v281_v35, 16 }
 0x373   :  { %v1199_v5 = vpop.xlane.xlu0 %400 }
 0x374   :  { %vm402_vm10 = vcmp.eq.f32.partialorder %v1149_v41, %v1199_v5  ;;  %v407_v2 = vcvt.f32.s32 %v1199_v5 }
 0x375   :  { %v403_v22 = vsel %vm402_vm10, %v398_v27, inf }
 0x37a   :  { %v1201_v7 = vpop.xlane.xlu0 %464  ;;  %v1203_v8 = vpop.xlane.xlu1 %449 }
 0x37b   :  { %vm451_vm11 = vcmp.eq.f32.partialorder %v1172_v54, %v1203_v8  ;;  %vm466_vm2 = vcmp.eq.f32.partialorder %v1170_v53, %v1201_v7  ;;  %v266_v54 = vcvt.f32.s32 %v1189_v62  ;;  %v456_v63 = vcvt.f32.s32 %v1203_v8 }
 0x37c   :  { %v452_v51 = vsel %vm451_vm11, %v447_v26, inf  ;;  %v467_v41 = vsel %vm466_vm2, %v462_v34, inf  ;;  %v344_v26 = vshll.u32 %v343_v55, 16 }
 0x37e   :  { %v510_v9 = vpop.permute.xlu0 %509  ;;  %v508_v10 = vpop.permute.xlu1 %507 }
 0x37f   :  { %v516_v11 = vsel %vm237_vm3, %v510_v9, 0.0  ;;  %v513_v14 = vsel %vm237_vm3, %v508_v10, 0.0 }
 0x380   :  { %517 = vadd.xlane.f32.xlu1 %v516_v11  ;;  %514 = vadd.xlane.f32.xlu0 %v513_v14 }
 0x382   :  { %v524_v16 = vpop.permute.xlu1 %523  ;;  %v542_v24 = vpop.permute.xlu0 %541 }
 0x383   :  { %v529_v19 = vsel %vm237_vm3, %v524_v16, 0.0  ;;  %v548_v31 = vsel %vm237_vm3, %v542_v24, 0.0  ;;  %v267_v16 = vshll.u32 %v266_v54, 16  ;;  %v457_v54 = vshll.u32 %v456_v63, 16 }
 0x384   :  { %530 = vadd.xlane.f32.xlu0 %v529_v19  ;;  %v329_v19 = vshll.u32 %v328_v58, 16 }
 0x386   :  { %v526_v20 = vpop.permute.xlu1 %525 }
 0x387   :  { %v532_v23 = vsel %vm237_vm3, %v526_v20, 0.0  ;;  %v392_v20 = vcvt.f32.s32 %v1197_v4 }
 0x388   :  { %533 = vadd.xlane.f32.xlu1 %v532_v23 }
 0x389   :  { %v393_v50 = vshll.u32 %v392_v20, 16 }
 0x38a   :  { %v540_v29 = vpop.permute.xlu1 %539 }
 0x38b   :  { %v545_v33 = vsel %vm237_vm3, %v540_v29, 0.0 }
 0x38c   :  { %549 = vadd.xlane.f32.xlu1 %v548_v31  ;;  %546 = vadd.xlane.f32.xlu0 %v545_v33 }
 0x390   :  { %263 = vmin.xlane.f32.xlu1 %v262_v13  ;;  %325 = vmin.xlane.f32.xlu0 %v324_v39 }
 0x394   :  { %389 = vmin.xlane.f32.xlu1 %v388_v44  ;;  %278 = vmin.xlane.f32.xlu0 %v277_v12  ;;  %v408_v44 = vshll.u32 %v407_v2, 16  ;;  %v471_v12 = vcvt.f32.s32 %v1201_v7 }
 0x398   :  { %340 = vmin.xlane.f32.xlu1 %v339_v47  ;;  %404 = vmin.xlane.f32.xlu0 %v403_v22 }
 0x39c   :  { %453 = vmin.xlane.f32.xlu1 %v452_v51  ;;  %468 = vmin.xlane.f32.xlu0 %v467_v41 }
 0x3b3   :  { %v497_v30 = vpop.xlane.xlu0 %496 }
 0x3b4   :  { %v501_v53 = vsel %vm285_vm9, %v497_v30, 0.0 }
 0x3b7   :  { %v500_v48 = vpop.xlane.xlu0 %499 }
 0x3b8   :  { %v502_v62 = vsel %vm285_vm9, %v500_v48, 0.0 }
 0x40d   :  { %v515_v52 = vpop.xlane.xlu0 %514  ;;  %v518_v49 = vpop.xlane.xlu1 %517 }
 0x40e   :  { %v519_v18 = vsel %vm1071_vm8, %v515_v52, 0.0  ;;  %v520_v10 = vsel %vm1071_vm8, %v518_v49, 0.0  ;;  %v472_v49 = vshll.u32 %v471_v12, 16 }
 0x40f   :  { %v521_v9 = vadd.f32 %v519_v18, %v501_v53  ;;  %v522_v23 = vadd.f32 %v520_v10, %v502_v62 }
 0x411   :  { %v531_v56 = vpop.xlane.xlu0 %530 }
 0x412   :  { %v535_v60 = vsel %vm1082_vm12, %v531_v56, 0.0 }
 0x413   :  { %v537_v14 = vadd.f32 %v535_v60, %v521_v9 }
 0x415   :  { %v534_v57 = vpop.xlane.xlu1 %533 }
 0x416   :  { %v536_v1 = vsel %vm1082_vm12, %v534_v57, 0.0 }
 0x417   :  { %v538_v33 = vadd.f32 %v536_v1, %v522_v23 }
 0x419   :  { %v547_v21 = vpop.xlane.xlu0 %546  ;;  %v550_v61 = vpop.xlane.xlu1 %549 }
 0x41a   :  { %v551_v11 = vsel %vm1090_vm15, %v547_v21, 0.0  ;;  %v552_v45 = vsel %vm1090_vm15, %v550_v61, 0.0 }
 0x41b   :  { %v553_v28 = vadd.f32 %v551_v11, %v537_v14  ;;  %v554_v13 = vadd.f32 %v552_v45, %v538_v33 }
 0x41d   :  { %v326_v24 = vpop.xlane.xlu0 %325  ;;  %v264_v25 = vpop.xlane.xlu1 %263  ;;  %728 = vlog2.f32 %v553_v28 }
 0x41e   :  { %v327_v29 = vcvt.f32.s32 %v326_v24  ;;  %v265_v31 = vcvt.f32.s32 %v264_v25  ;;  %730 = vlog2.f32 %v554_v13 }
 0x420   :  { %v330_v36 = vadd.s32 %v329_v19, %v327_v29  ;;  %v268_v38 = vadd.s32 %v267_v16, %v265_v31 }
 0x421   :  { %v279_v39 = vpop.xlane.xlu0 %278  ;;  %v390_v4 = vpop.xlane.xlu1 %389 }
 0x422   :  { %v353_v6 = vadd.s32 8, %v330_v36  ;;  %vm291_vm8 = vcmp.eq.s32.totalorder %v1050_v37, %v268_v38  ;;  %v391_v42 = vcvt.f32.s32 %v390_v4  ;;  %v280_v15 = vcvt.f32.s32 %v279_v39 }
 0x423   :  { %v293_v17 = vsel %vm291_vm8, 1.0, %v882_v0 }
 0x424   :  { %vm355_vm9 = vcmp.eq.s32.totalorder %v1050_v37, %v353_v6  ;;  %v394_v3 = vadd.s32 %v393_v50, %v391_v42  ;;  %v283_v34 = vadd.s32 %v282_v43, %v280_v15 }
 0x425   :  { %v357_v5 = vsel %vm355_vm9, 1.0, %v882_v0  ;;  %v405_v27 = vpop.xlane.xlu0 %404  ;;  %v341_v32 = vpop.xlane.xlu1 %340 }
 0x426   :  { %v359_v46 = vadd.f32 %v357_v5, %v293_v17  ;;  %v417_v47 = vadd.s32 16, %v394_v3  ;;  %v406_v22 = vcvt.f32.s32 %v405_v27  ;;  %v342_v51 = vcvt.f32.s32 %v341_v32 }
 0x427   :  { %vm292_vm15 = vcmp.eq.s32.totalorder %v1050_v37, %v283_v34  ;;  %v729_v8 = vpop.eup %728 }
 0x428   :  { %vm419_vm12 = vcmp.eq.s32.totalorder %v1050_v37, %v417_v47  ;;  %v409_v41 = vadd.s32 %v408_v44, %v406_v22  ;;  %v345_v30 = vadd.s32 %v344_v26, %v342_v51  ;;  %v294_v61 = vsel %vm292_vm15, 1.0, %v882_v0  ;;  %v731_v1 = vpop.eup %730 }
 0x429   :  { %v421_v7 = vsel %vm419_vm12, 1.0, %v882_v0  ;;  %v469_v48 = vpop.xlane.xlu0 %468  ;;  %v454_v52 = vpop.xlane.xlu1 %453  ;;  %v556_v11 = vmul.f32 0.6931472, %v729_v8  ;;  %v558_v25 = vmul.f32 0.6931472, %v731_v1 }
 0x42a   :  { %v423_v56 = vadd.f32 %v421_v7, %v359_v46  ;;  %v418_v57 = vadd.s32 16, %v409_v41  ;;  %v470_v18 = vcvt.f32.s32 %v469_v48  ;;  %v354_v58 = vadd.s32 8, %v345_v30 }
 0x42b   :  { %v455_v53 = vcvt.f32.s32 %v454_v52  ;;  %v559_v24 = vsub.f32 %v1166_v40, %v556_v11  ;;  %v560_v31 = vsub.f32 %v1178_v59, %v558_v25 }
 0x42c   :  { %v473_v60 = vadd.s32 %v472_v49, %v470_v18  ;;  %vm420_vm13 = vcmp.eq.s32.totalorder %v1050_v37, %v418_v57  ;;  %vm356_vm14 = vcmp.eq.s32.totalorder %v1050_v37, %v354_v58 }
 0x42d   :  { %v458_v21 = vadd.s32 %v457_v54, %v455_v53  ;;  %v358_v9 = vsel %vm356_vm14, 1.0, %v882_v0  ;;  %v422_v16 = vsel %vm420_vm13, 1.0, %v882_v0 }
 0x42e   :  { %v482_v10 = vadd.s32 24, %v473_v60  ;;  %v360_v62 = vadd.f32 %v358_v9, %v294_v61 }
 0x42f   :  { %v481_v14 = vadd.s32 24, %v458_v21 }
 0x430   :  { %vm484_vm4 = vcmp.eq.s32.totalorder %v1050_v37, %v482_v10  ;;  %v424_v19 = vadd.f32 %v422_v16, %v360_v62 }
 0x431   :  { %v486_v20 = vsel %vm484_vm4, 1.0, %v882_v0  ;;  %vm483_vm5 = vcmp.eq.s32.totalorder %v1050_v37, %v481_v14 }
 0x432   :  { %v485_v23 = vsel %vm483_vm5, 1.0, %v882_v0  ;;  %v488_v28 = vadd.f32 %v486_v20, %v424_v19 }
 0x433   :  { %v487_v45 = vadd.f32 %v485_v23, %v423_v56 }
 0x434   :  { %562 = vst.msk [vmem:[#allocation11 + $0x8] sm:$0xff] %vm114_vm1, %v488_v28  ;;  %v564_v33 = vmul.f32 %v560_v31, %v488_v28 }
 0x435   :  { %561 = vst.msk [vmem:[#allocation11] sm:$0xff] %vm114_vm1, %v487_v45  ;;  %v563_v29 = vmul.f32 %v559_v24, %v487_v45 }
 0x436   :  { %v568_v40 = vsel %vm237_vm3, %v564_v33, 0.0 }
 0x437   :  { %612 = vrot.lane.b32.xlu0 %v563_v29, %s888_s18  ;;  %578 = vrot.lane.b32.xlu1 %v563_v29, %s886_s14  ;;  %v565_v0 = vsel %vm237_vm3, %v563_v29, 0.0 }
 0x43b   :  { %580 = vrot.lane.b32.xlu0 %v564_v33, %s886_s14  ;;  %595 = vrot.lane.b32.xlu1 %v563_v29, %s887_s17 }
 0x43f   :  { %597 = vrot.lane.b32.xlu0 %v564_v33, %s887_s17 }
 0x443   :  { %614 = vrot.lane.b32.xlu0 %v564_v33, %s888_s18 }
 0x45f   :  { %566 = vadd.xlane.f32.xlu1 %v565_v0 }
 0x462   :  { %569 = vadd.xlane.f32.xlu0 %v568_v40 }
 0x4a9   :  { %v613_v59 = vpop.permute.xlu0 %612  ;;  %v579_v35 = vpop.permute.xlu1 %578 }
 0x4aa   :  { %v584_v36 = vsel %vm237_vm3, %v579_v35, 0.0  ;;  %v618_v6 = vsel %vm237_vm3, %v613_v59, 0.0 }
 0x4ab   :  { %585 = vadd.xlane.f32.xlu1 %v584_v36 }
 0x4ad   :  { %v581_v38 = vpop.permute.xlu0 %580  ;;  %v596_v50 = vpop.permute.xlu1 %595 }
 0x4ae   :  { %v587_v2 = vsel %vm237_vm3, %v581_v38, 0.0  ;;  %v601_v13 = vsel %vm237_vm3, %v596_v50, 0.0 }
 0x4af   :  { %588 = vadd.xlane.f32.xlu0 %v587_v2  ;;  %602 = vadd.xlane.f32.xlu1 %v601_v13 }
 0x4b1   :  { %v598_v39 = vpop.permute.xlu0 %597 }
 0x4b2   :  { %v604_v4 = vsel %vm237_vm3, %v598_v39, 0.0 }
 0x4b3   :  { %605 = vadd.xlane.f32.xlu0 %v604_v4  ;;  %619 = vadd.xlane.f32.xlu1 %v618_v6 }
 0x4b5   :  { %v615_v42 = vpop.permute.xlu0 %614 }
 0x4b6   :  { %v621_v55 = vsel %vm237_vm3, %v615_v42, 0.0 }
 0x4b7   :  { %622 = vadd.xlane.f32.xlu1 %v621_v55 }
 0x4b8   :  { %831 = shalt.err (!%p828_p8)
}
 0x4b9   :  { %s832_s25 = scalar_lea.hbm %s1346_s6, 256 }
 0x4ba   :  { %p833_p9 = scmp.ne.s32.totalorder %s1346_s6, %s832_s25  ;;  %p836_p10 = scmp.lt.u32.totalorder %s832_s25, %s1346_s6 }
 0x4bc   :  { %p838_p11 = pnand %p836_p10, %p833_p9 }
 0x4be   :  { %841 = shalt.err (!%p838_p11)
}
 0x4bf   :  { %643 = dma.vmem_to_hbm [thread:$0]  %s638_s21, 256, %s1346_s6, [#allocation4], %s875_s15, %s875_s15, %s876_s16  }
 0x4c0   :  { %s842_s12 = scalar_lea.vmem %s1293_s23, 256  ;;  %p847_p13 = scmp.lt.s32.totalorder %s1293_s23, %s1293_s23 }
 0x4c1   :  { %p843_p12 = scmp.ne.s32.totalorder %s1293_s23, %s842_s12  ;;  %p848_p0 = scmp.lt.s32.totalorder %s842_s12, %s842_s12 }
 0x4c3   :  { %p849_p1 = por %p848_p0, %p847_p13 }
 0x4c5   :  { %p850_p2 = pnand %p849_p1, %p843_p12 }
 0x4c7   :  { %853 = shalt.err (!%p850_p2)
}
 0x4c8   :  { %s854_s4 = scalar_lea.hbm %s1347_s7, 256 }
 0x4c9   :  { %p855_p3 = scmp.ne.s32.totalorder %s1347_s7, %s854_s4  ;;  %p858_p4 = scmp.lt.u32.totalorder %s854_s4, %s1347_s7 }
 0x4cb   :  { %p860_p5 = pnand %p858_p4, %p855_p3 }
 0x4cd   :  { %863 = shalt.err (!%p860_p5)
}
 0x4ce   :  { %655 = dma.vmem_to_hbm [thread:$0]  %s1293_s23, 256, %s1347_s7, [#allocation12], %s875_s15, %s875_s15, %s876_s16   ;;  %vm590_vm1 = vcmp.eq.s32.totalorder %v1050_v37, 1  ;;  %vm571_vm3 = vcmp.eq.s32.totalorder %v1050_v37, 0  ;;  %vm607_vm0 = vcmp.eq.s32.totalorder %v1050_v37, 2  ;;  %vm624_vm6 = vcmp.eq.s32.totalorder %v1050_v37, 3 }
 0x4cf   :  { %vm629_vm7 = vcmask 31744  }
 0x4ec   :  { %v567_v15 = vpop.xlane.xlu1 %566 }
 0x4ed   :  { %v572_v17 = vsel %vm571_vm3, %v567_v15, 0.0 }
 0x4ef   :  { %v570_v43 = vpop.xlane.xlu0 %569 }
 0x4f0   :  { %v573_v63 = vsel %vm571_vm3, %v570_v43, 0.0 }
 0x538   :  { %v586_v3 = vpop.xlane.xlu1 %585 }
 0x539   :  { %v591_v44 = vsel %vm590_vm1, %v586_v3, 0.0 }
 0x53a   :  { %v593_v32 = vadd.f32 %v591_v44, %v572_v17 }
 0x53c   :  { %v589_v12 = vpop.xlane.xlu0 %588  ;;  %v603_v5 = vpop.xlane.xlu1 %602 }
 0x53d   :  { %v608_v27 = vsel %vm607_vm0, %v603_v5, 0.0  ;;  %v592_v46 = vsel %vm590_vm1, %v589_v12, 0.0 }
 0x53e   :  { %v610_v47 = vadd.f32 %v608_v27, %v593_v32  ;;  %v594_v41 = vadd.f32 %v592_v46, %v573_v63 }
 0x540   :  { %v606_v22 = vpop.xlane.xlu0 %605  ;;  %v620_v26 = vpop.xlane.xlu1 %619 }
 0x541   :  { %v609_v34 = vsel %vm607_vm0, %v606_v22, 0.0  ;;  %v625_v51 = vsel %vm624_vm6, %v620_v26, 0.0 }
 0x542   :  { %v627_v7 = vadd.f32 %v625_v51, %v610_v47  ;;  %v611_v30 = vadd.f32 %v609_v34, %v594_v41 }
 0x544   :  { %630 = vst.msk [vmem:[%s1348_s8] sm:$0xff] %vm629_vm7, %v627_v7  ;;  %v623_v48 = vpop.xlane.xlu1 %622 }
 0x545   :  { %v626_v52 = vsel %vm624_vm6, %v623_v48, 0.0 }
 0x546   :  { %v628_v49 = vadd.f32 %v626_v52, %v611_v30 }
 0x548   :  { %631 = vst.msk [vmem:[%s1348_s8 + $0x8] sm:$0xff] %vm629_vm7, %v628_v49 }
 0x549   :  { %870 = dma.done.wait [#allocation4], 256  }
 0x54a   :  { %871 = vsyncadd [#allocation4], 4294967040 }
 0x54b   :  { %872 = dma.done.wait [#allocation12], 256  }
 0x54c   :  { %873 = vsyncadd [#allocation12], 4294967040 }
 0x54d   :  { %666 = vsyncpa [#allocation3], 1 }
 0x54e   :  { %667 = vsyncpa [#allocation6], 1 }
 0x54f   :  { %668 = vsyncpa [#allocation9], 1 }
 0x550   :  { %669 = vsyncpa [#allocation4], 1 }
 0x551   :  { %670 = vsyncpa [#allocation12], 1 }

</bundles_post_ra>
